<compile_context>
chip_gen: v7x
topology: tpu7x:2x2x1
jax: 0.10.0
libtpu: 0.0.40
codegen_flags: <defaults>
</compile_context>

<pallas_src>
import math

import jax
import jax.numpy as jnp
from jax.experimental import pallas as pl
from jax.experimental.pallas import tpu as pltpu


def _round_up(a, b):
    return ((a + b - 1) // b) * b


# ---------------------------------------------------------------------------
# Kernel: one batch-row tile of   out = x @ Wt + b   (MXU matmul + VPU bias add)
# ---------------------------------------------------------------------------
def _linear_kernel(x_ref, w_ref, b_ref, o_ref):
    # x_ref: (tm, Kp)   batch-row tile (Kp = pack*K when lane-packed)
    # w_ref: (Kp, Np)   resident weight (block-diagonal when packed / zero-padded cols)
    # b_ref: (1, Np)    resident bias row
    # o_ref: (tm, Np)   lane-dense output tile (Np is a multiple of 128)
    acc = jnp.dot(x_ref[...], w_ref[...], preferred_element_type=jnp.float32)
    o_ref[...] = (acc + b_ref[...]).astype(o_ref.dtype)


def prepare_linear_params(weight, bias, *, dtype=jnp.float32,
                          max_packed_weight_bytes=2 * 1024 * 1024):
    """One-time preprocessing of nn.Linear params (PyTorch layout weight: (N, K)).

    - Pre-transposes the weight to (K, N) so the kernel is a plain x @ Wt matmul.
    - If N < 128 and 128 % N == 0, builds a block-diagonal (pack*K, 128) weight so
      `pack = 128 // N` batch rows are processed per slab row: both the x loads and
      the output stores become lane-dense.
    - Otherwise zero-pads the weight columns (and bias) up to the next multiple of
      128 so the output block's last dim is lane-dense; the wrapper slices back N.
    """
    N, K = weight.shape
    wt = jnp.asarray(weight, dtype).T          # (K, N)
    b = jnp.asarray(bias, dtype)
    itemsize = jnp.dtype(dtype).itemsize

    pack = 1
    if 0 < N < 128 and 128 % N == 0:
        cand = 128 // N
        if (cand * K) * (cand * N) * itemsize <= max_packed_weight_bytes:
            pack = cand

    if pack > 1:
        w2d = jnp.kron(jnp.eye(pack, dtype=wt.dtype), wt)    # (pack*K, 128) block-diag
        b2d = jnp.tile(b, pack).reshape(1, pack * N)
    else:
        n_pad = _round_up(max(N, 1), 128)
        w2d = jnp.pad(wt, ((0, 0), (0, n_pad - N)))           # (K, n_pad)
        b2d = jnp.pad(b, (0, n_pad - N)).reshape(1, n_pad)

    return {"w2d": w2d, "b2d": b2d, "wt": wt, "bias": b,
            "in_features": K, "out_features": N, "pack": pack}


# VMEM working-set budget (x/out double buffers + resident weight/bias).  40 MiB is
# safe on v7x (64 MiB physical); v5e/v6e have 128 MiB physical and we raise the
# scoped limit explicitly via vmem_limit_bytes below.
_VMEM_BUDGET_BYTES = 40 * 1024 * 1024
_VMEM_LIMIT_BYTES = 48 * 1024 * 1024


def linear_regression_forward(x, params, *, tm=2048, force_pallas=False):
    """Pallas equivalent of nn.Linear(inputSize, outputSize).forward(x).

    x:      (B, inputSize)
    params: output of prepare_linear_params(weight, bias)
    returns (B, outputSize), same dtype as x
    """
    B, K = x.shape
    assert K == params["in_features"]
    N = params["out_features"]
    pack = params["pack"]
    w2d = params["w2d"]
    b2d = params["b2d"]
    kp, np_ = w2d.shape
    x_item = jnp.dtype(x.dtype).itemsize
    w_item = jnp.dtype(w2d.dtype).itemsize

    rows = pl.cdiv(B, pack)                 # slab rows (pack batch rows per slab row)

    # ---- small-batch fast path: the fixed pallas_call + padding cost dominates;
    #      XLA's fused matmul is strictly better when everything fits in <=2 tiles.
    if not force_pallas and rows <= 2 * tm:
        out = jnp.dot(x, params["wt"], preferred_element_type=jnp.float32) + params["bias"]
        return out.astype(x.dtype)

    # ---- batch tile: as big as tm / VMEM allow, but capped so the grid has >= 2
    #      steps whenever possible (lets "parallel" shard across v7x's 2 TCs).
    tm_rows = _round_up(max(8, min(tm, _round_up(rows, 8))), 8)
    half_rows = _round_up(pl.cdiv(rows, 2), 8)
    tm_rows = min(tm_rows, max(8, half_rows))

    bytes_per_row = 2 * x_item * (kp + np_)            # x + out, double-buffered
    fixed_bytes = w_item * (kp * np_ + np_)            # resident weight + bias (Buffered(1))
    max_tm_by_vmem = max(8, ((_VMEM_BUDGET_BYTES - fixed_bytes) // bytes_per_row) // 8 * 8)
    tm_rows = min(tm_rows, max_tm_by_vmem)

    rows_pad = _round_up(rows, tm_rows)
    b_pad = rows_pad * pack

    x_pad = x if b_pad == B else jnp.pad(x, ((0, b_pad - B), (0, 0)))
    x2d = x_pad.reshape(rows_pad, kp)        # pure row-major view; lane-dense when packed

    grid = (rows_pad // tm_rows,)
    out2d = pl.pallas_call(
        _linear_kernel,
        out_shape=jax.ShapeDtypeStruct((rows_pad, np_), x.dtype),
        grid_spec=pltpu.PrefetchScalarGridSpec(
            num_scalar_prefetch=0,
            grid=grid,
            in_specs=[
                # x tile marches over batch rows (double-buffered by default)
                pl.BlockSpec((tm_rows, kp), lambda i: (i, 0)),
                # weight / bias never change block -> single buffer saves VMEM
                pl.BlockSpec((kp, np_), lambda i: (0, 0),
                             pipeline_mode=pl.Buffered(1)),
                pl.BlockSpec((1, np_), lambda i: (0, 0),
                             pipeline_mode=pl.Buffered(1)),
            ],
            out_specs=pl.BlockSpec((tm_rows, np_), lambda i: (i, 0)),
        ),
        compiler_params=pltpu.CompilerParams(
            dimension_semantics=("parallel",),
            vmem_limit_bytes=_VMEM_LIMIT_BYTES,
        ),
        # Cost of the computation actually performed (packed / padded shapes).
        cost_estimate=pl.CostEstimate(
            flops=2 * rows_pad * kp * np_,
            transcendentals=0,
            bytes_accessed=(x_item * rows_pad * kp          # x in
                            + w_item * (kp * np_ + np_)      # weight + bias in
                            + x_item * rows_pad * np_),      # out
        ),
    )(x2d, w2d, b2d)

    # Undo the lane packing (pure view) / column padding and drop padded rows.
    if pack > 1:
        return out2d.reshape(b_pad, N)[:B]
    return out2d[:B, :N]


def init_linear_params(key, input_size, output_size):
    """Deterministic init matching PyTorch nn.Linear default (uniform +/- 1/sqrt(fan_in))."""
    kw, kb = jax.random.split(key)
    bound = 1.0 / math.sqrt(input_size)
    weight = jax.random.uniform(kw, (output_size, input_size),
                                minval=-bound, maxval=bound, dtype=jnp.float32)
    bias = jax.random.uniform(kb, (output_size,),
                              minval=-bound, maxval=bound, dtype=jnp.float32)
    return weight, bias


if __name__ == "__main__":
    key = jax.random.PRNGKey(0)
    k_x, k_x2, k_x3, k_p, k_p2 = jax.random.split(key, 5)

    # ---- case 1: N divides 128 -> lane-packed path (pack = 128 // N = 8) ----
    input_size, output_size = 32, 16
    weight, bias = init_linear_params(k_p, input_size, output_size)
    params = prepare_linear_params(weight, bias)   # one-time: transpose + lane packing

    x = jax.random.normal(k_x, (8, input_size), dtype=jnp.float32)
    out = jax.block_until_ready(linear_regression_forward(x, params, force_pallas=True))
    ref = x @ weight.T + bias
    assert out.shape == (8, output_size)
    assert jnp.allclose(out, ref, atol=1e-5, rtol=1e-5), "mismatch vs reference (B=8)"

    # batch not divisible by pack/tile: padding path + multi-step grid (2 TC split)
    x2 = jax.random.normal(k_x2, (301, input_size), dtype=jnp.float32)
    out2 = jax.block_until_ready(linear_regression_forward(x2, params, force_pallas=True))
    ref2 = x2 @ weight.T + bias
    assert out2.shape == (301, output_size)
    assert jnp.allclose(out2, ref2, atol=1e-5, rtol=1e-5), "mismatch vs reference (B=301)"

    # small-batch fast path (no pallas_call) must match too
    out_fast = jax.block_until_ready(linear_regression_forward(x2, params))
    assert jnp.allclose(out_fast, ref2, atol=1e-5, rtol=1e-5), "fast-path mismatch"

    # ---- case 2: N does not divide 128 -> zero-padded lane-dense output path ----
    output_size2 = 10
    weight2, bias2 = init_linear_params(k_p2, input_size, output_size2)
    params2 = prepare_linear_params(weight2, bias2)
    x3 = jax.random.normal(k_x3, (13, input_size), dtype=jnp.float32)
    out3 = jax.block_until_ready(linear_regression_forward(x3, params2, force_pallas=True))
    ref3 = x3 @ weight2.T + bias2
    assert out3.shape == (13, output_size2)
    assert jnp.allclose(out3, ref3, atol=1e-5, rtol=1e-5), "mismatch vs reference (N=10)"

    print("KERNEL_OK")
</pallas_src>

<mosaic_0001>
module attributes {stable_mosaic.version = 11 : i64} {
  func.func @_linear_kernel(%arg0: i32, %arg1: memref<8x256xf32, #tpu.memory_space<vmem>>, %arg2: memref<256x128xf32, #tpu.memory_space<vmem>>, %arg3: memref<1x128xf32, #tpu.memory_space<vmem>>, %arg4: memref<8x128xf32, #tpu.memory_space<vmem>>) attributes {dimension_semantics = [#tpu.dimension_semantics<parallel>], iteration_bounds = array<i64: 1>, scalar_prefetch = 0 : i64, scratch_operands = 0 : i64, tpu.core_type = #tpu.core_type<tc>, window_params = [{transform_indices = @transform_0, window_bounds = array<i64: 8, 256>}, {pipeline_mode = #tpu.pipeline_mode<synchronous>, transform_indices = @transform_1, window_bounds = array<i64: 256, 128>}, {pipeline_mode = #tpu.pipeline_mode<synchronous>, transform_indices = @transform_2, window_bounds = array<i64: 1, 128>}, {transform_indices = @transform_3, window_bounds = array<i64: 8, 128>}]} {
    %c0 = arith.constant 0 : index
    %c0_0 = arith.constant 0 : index
    %0 = vector.load %arg1[%c0, %c0_0] : memref<8x256xf32, #tpu.memory_space<vmem>>, vector<8x256xf32>
    %c0_1 = arith.constant 0 : index
    %c0_2 = arith.constant 0 : index
    %1 = vector.load %arg2[%c0_1, %c0_2] : memref<256x128xf32, #tpu.memory_space<vmem>>, vector<256x128xf32>
    %cst = arith.constant dense<0.000000e+00> : vector<8x128xf32>
    %2 = tpu.matmul %0, %1, %cst {dimension_numbers = #tpu.dot_dimension_numbers<[1], [0], [0], [1], [0, 0, 1, 1], [], []>} : vector<8x256xf32>, vector<256x128xf32>, vector<8x128xf32> -> vector<8x128xf32>
    %c0_3 = arith.constant 0 : index
    %c0_4 = arith.constant 0 : index
    %3 = vector.load %arg3[%c0_3, %c0_4] : memref<1x128xf32, #tpu.memory_space<vmem>>, vector<1x128xf32>
    %4 = vector.broadcast %3 : vector<1x128xf32> to vector<8x128xf32>
    %5 = arith.addf %2, %4 : vector<8x128xf32>
    %c0_5 = arith.constant 0 : index
    %c0_6 = arith.constant 0 : index
    %6 = vector.load %arg4[%c0_5, %c0_6] : memref<8x128xf32, #tpu.memory_space<vmem>>, vector<8x128xf32>
    tpu.vector_store %arg4[%c0_5, %c0_6], %5 {strides = array<i32>} : memref<8x128xf32, #tpu.memory_space<vmem>>, vector<8x128xf32>,
    return
  }
  func.func @transform_0(%arg0: i32) -> (i32, i32) {
    %c0_i32 = arith.constant 0 : i32
    %c0_i32_0 = arith.constant 0 : i32
    return %arg0, %c0_i32 : i32, i32
  }
  func.func @transform_1(%arg0: i32) -> (i32, i32) {
    %c0_i32 = arith.constant 0 : i32
    %c0_i32_0 = arith.constant 0 : i32
    %c0_i32_1 = arith.constant 0 : i32
    return %c0_i32, %c0_i32_0 : i32, i32
  }
  func.func @transform_2(%arg0: i32) -> (i32, i32) {
    %c0_i32 = arith.constant 0 : i32
    %c0_i32_0 = arith.constant 0 : i32
    %c0_i32_1 = arith.constant 0 : i32
    return %c0_i32, %c0_i32_0 : i32, i32
  }
  func.func @transform_3(%arg0: i32) -> (i32, i32) {
    %c0_i32 = arith.constant 0 : i32
    %c0_i32_0 = arith.constant 0 : i32
    return %arg0, %c0_i32 : i32, i32
  }
}

</mosaic_0001>

<bundles_post_ra>
// kernel: tpu_custom_call.1
= control target key start
LH: loop header
LB: loop body
LE: loop exit
PB: predicated region body
PF: predicated region fallthrough
CT: control target
= control target key end

     0   :  { %8 = vsyncpa [#allocation3], 0  ;;  %s385_s0 = inlined_call_operand.hbm [shape: f32[8,256], index: 0, kind: input, shape index: {}]   ;;  %s386_s1 = inlined_call_operand.hbm [shape: f32[256,128], index: 1, kind: input, shape index: {}]   ;;  %s387_s2 = inlined_call_operand.vmem [shape: f32[1,128], index: 2, kind: input, shape index: {}]   ;;  %s388_s3 = inlined_call_operand.hbm [shape: f32[8,128], index: 3, kind: output, shape index: {}]  }
   0x1   :  { %9 = vsyncpa [#allocation6], 0 }
   0x2   :  { %10 = vsyncpa [#allocation4], 0  ;;  %s314_s12 = smov [#allocation2]   ;;  %s315_s14 = smov [#allocation5]  }
   0x3   :  { %s17_s13 = sshll.u32 %s314_s12, 4  ;;  %s26_s15 = sshll.u32 %s315_s14, 4  ;;  %s18_s13 = int_to_ptr.vmem [resolvable:$true] %s17_s13  ;;  %s339_s15 = int_to_ptr.vmem [resolvable:$true] %s26_s15 }
   0x4   :  { %s242_s18 = scalar_lea.hbm %s385_s0, 256 }
   0x5   :  { %p243_p0 = scmp.ne.s32.totalorder %s385_s0, %s242_s18  ;;  %p246_p1 = scmp.lt.u32.totalorder %s242_s18, %s385_s0 }
   0x7   :  { %p248_p2 = pnand %p246_p1, %p243_p0 }
   0x9   :  { %251 = shalt.err (!%p248_p2)
}
   0xa   :  { %s252_s23 = scalar_lea.vmem %s18_s13, 256  ;;  %p257_p4 = scmp.lt.s32.totalorder %s18_s13, %s18_s13 }
   0xb   :  { %p253_p3 = scmp.ne.s32.totalorder %s18_s13, %s252_s23  ;;  %p258_p5 = scmp.lt.s32.totalorder %s252_s23, %s252_s23 }
   0xd   :  { %p259_p6 = por %p258_p5, %p257_p4 }
   0xf   :  { %p260_p7 = pnand %p259_p6, %p253_p3 }
  0x11   :  { %263 = shalt.err (!%p260_p7)
}
  0x12   :  { %20 = dma.hbm_to_vmem [thread:$0]  %s385_s0, 256, %s18_s13, [#allocation3]  }
  0x13   :  { %s264_s28 = scalar_lea.hbm %s386_s1, 4096 }
  0x14   :  { %p265_p8 = scmp.ne.s32.totalorder %s386_s1, %s264_s28  ;;  %p268_p9 = scmp.lt.u32.totalorder %s264_s28, %s386_s1 }
  0x16   :  { %p270_p10 = pnand %p268_p9, %p265_p8 }
  0x18   :  { %273 = shalt.err (!%p270_p10)
}
  0x19   :  { %s274_s6 = scalar_lea.vmem %s339_s15, 4096  ;;  %p279_p12 = scmp.lt.s32.totalorder %s339_s15, %s339_s15 }
  0x1a   :  { %p275_p11 = scmp.ne.s32.totalorder %s339_s15, %s274_s6  ;;  %p280_p13 = scmp.lt.s32.totalorder %s274_s6, %s274_s6 }
  0x1c   :  { %p281_p0 = por %p280_p13, %p279_p12 }
  0x1e   :  { %p282_p1 = pnand %p281_p0, %p275_p11 }
  0x20   :  { %285 = shalt.err (!%p282_p1)
}
  0x21   :  { %s316_s0 = smov 128   ;;  %s317_s7 = smov 8  }
  0x22   :  { %32 = dma.hbm_to_vmem [thread:$0]  %s386_s1, 4096, %s339_s15, [#allocation6], %s316_s0, %s316_s0, %s317_s7  }
  0x23   :  { %308 = dma.done.wait [#allocation3], 256  }
  0x24   :  { %309 = vsyncadd [#allocation3], 4294967040 }
  0x25   :  { %310 = dma.done.wait [#allocation6], 4096  }
  0x26   :  { %311 = vsyncadd [#allocation6], 4294963200  ;;  %v59_v0 = vld [vmem:[#allocation5 + $0x80] sm:$0xff]  ;;  %v60_v1 = vld [vmem:[#allocation5 + $0x88] sm:$0xff]  ;;  %s318_s11 = smov [#allocation7]  }
  0x27   :  { %v43_v2 = vld [vmem:[#allocation5] sm:$0xff]  ;;  %v205_v3 = vpack.c.bf16 %v60_v1, %v59_v0  ;;  %v44_v4 = vld [vmem:[#allocation5 + $0x8] sm:$0xff]  ;;  %v61_v5 = vld [vmem:[#allocation5 + $0x90] sm:$0xff]  ;;  %s159_s12 = sshll.u32 %s318_s11, 4  ;;  %s160_s12 = int_to_ptr.vmem [resolvable:$true] %s159_s12 }
  0x28   :  { %v62_v6 = vld [vmem:[#allocation5 + $0x98] sm:$0xff]  ;;  %v207_v7 = vpack.c.bf16 %v44_v4, %v43_v2  ;;  %v45_v9 = vld [vmem:[#allocation5 + $0x10] sm:$0xff]  ;;  %v63_v11 = vld [vmem:[#allocation5 + $0xa0] sm:$0xff]  ;;  %s286_s13 = scalar_lea.vmem %s160_s12, 128  ;;  %p291_p3 = scmp.lt.s32.totalorder %s160_s12, %s160_s12 }
  0x29   :  { %v209_v8 = vpack.c.bf16 %v62_v6, %v61_v5  ;;  %v46_v10 = vld [vmem:[#allocation5 + $0x18] sm:$0xff]  ;;  %206 = vmatprep.subr.bf16.mxu0 %v205_v3  ;;  %v64_v12 = vld [vmem:[#allocation5 + $0xa8] sm:$0xff]  ;;  %v47_v15 = vld [vmem:[#allocation5 + $0x20] sm:$0xff]  ;;  %p287_p2 = scmp.ne.s32.totalorder %s160_s12, %s286_s13  ;;  %p292_p4 = scmp.lt.s32.totalorder %s286_s13, %s286_s13 }
  0x2a   :  { %208 = vmatpush3.bf16.msra.mxu0 %v207_v7  ;;  %v211_v13 = vpack.c.bf16 %v46_v10, %v45_v9  ;;  %v213_v14 = vpack.c.bf16 %v64_v12, %v63_v11  ;;  %v48_v16 = vld [vmem:[#allocation5 + $0x28] sm:$0xff]  ;;  %v65_v17 = vld [vmem:[#allocation5 + $0xb0] sm:$0xff]  ;;  %v66_v18 = vld [vmem:[#allocation5 + $0xb8] sm:$0xff] }
  0x2b   :  { %210 = vmatprep.subr.bf16.mxu0 %v209_v8  ;;  %v215_v19 = vpack.c.bf16 %v48_v16, %v47_v15  ;;  %v217_v20 = vpack.c.bf16 %v66_v18, %v65_v17  ;;  %v49_v21 = vld [vmem:[#allocation5 + $0x30] sm:$0xff]  ;;  %v50_v22 = vld [vmem:[#allocation5 + $0x38] sm:$0xff]  ;;  %v67_v23 = vld [vmem:[#allocation5 + $0xc0] sm:$0xff]  ;;  %p293_p5 = por %p292_p4, %p291_p3 }
  0x2c   :  { %v68_v24 = vld [vmem:[#allocation5 + $0xc8] sm:$0xff]  ;;  %v42_v25 = vld [vmem:[#allocation2 + $0x8] sm:$0xff]  ;;  %v219_v26 = vpack.c.bf16 %v50_v22, %v49_v21  ;;  %v51_v28 = vld [vmem:[#allocation5 + $0x40] sm:$0xff] }
  0x2d   :  { %146 = vmatprep.mubr.f32.mxu0 %v42_v25  ;;  %v221_v27 = vpack.c.bf16 %v68_v24, %v67_v23  ;;  %v52_v29 = vld [vmem:[#allocation5 + $0x48] sm:$0xff]  ;;  %v69_v30 = vld [vmem:[#allocation5 + $0xd0] sm:$0xff]  ;;  %v70_v31 = vld [vmem:[#allocation5 + $0xd8] sm:$0xff]  ;;  %p294_p6 = pnand %p293_p5, %p287_p2 }
  0x2e   :  { %212 = vmatpush3.bf16.msra.mxu0 %v211_v13  ;;  %v223_v32 = vpack.c.bf16 %v52_v29, %v51_v28  ;;  %v225_v33 = vpack.c.bf16 %v70_v31, %v69_v30  ;;  %v53_v34 = vld [vmem:[#allocation5 + $0x50] sm:$0xff]  ;;  %v54_v35 = vld [vmem:[#allocation5 + $0x58] sm:$0xff]  ;;  %v71_v36 = vld [vmem:[#allocation5 + $0xe0] sm:$0xff] }
  0x2f   :  { %214 = vmatprep.subr.bf16.mxu0 %v213_v14  ;;  %v72_v37 = vld [vmem:[#allocation5 + $0xe8] sm:$0xff]  ;;  %v227_v38 = vpack.c.bf16 %v54_v35, %v53_v34  ;;  %v55_v40 = vld [vmem:[#allocation5 + $0x60] sm:$0xff]  ;;  %v73_v42 = vld [vmem:[#allocation5 + $0xf0] sm:$0xff] }
  0x30   :  { %v229_v39 = vpack.c.bf16 %v72_v37, %v71_v36  ;;  %v56_v41 = vld [vmem:[#allocation5 + $0x68] sm:$0xff]  ;;  %v74_v43 = vld [vmem:[#allocation5 + $0xf8] sm:$0xff]  ;;  %v57_v46 = vld [vmem:[#allocation5 + $0x70] sm:$0xff] }
  0x31   :  { %v231_v44 = vpack.c.bf16 %v56_v41, %v55_v40  ;;  %v233_v45 = vpack.c.bf16 %v74_v43, %v73_v42  ;;  %v58_v47 = vld [vmem:[#allocation5 + $0x78] sm:$0xff]  ;;  %v41_v49 = vld [vmem:[#allocation2] sm:$0xff] }
  0x32   :  { %216 = vmatpush3.bf16.msra.mxu0 %v215_v19  ;;  %v235_v48 = vpack.c.bf16 %v58_v47, %v57_v46  ;;  %v169_v51 = vld [vmem:[%s387_s2] ss:$0 sm:$0xff] }
  0x33   :  { %218 = vmatprep.subr.bf16.mxu0 %v217_v20 }
  0x36   :  { %220 = vmatpush3.bf16.msra.mxu0 %v219_v26 }
  0x37   :  { %222 = vmatprep.subr.bf16.mxu0 %v221_v27 }
  0x3a   :  { %224 = vmatpush3.bf16.msra.mxu0 %v223_v32 }
  0x3b   :  { %226 = vmatprep.subr.bf16.mxu0 %v225_v33 }
  0x3e   :  { %228 = vmatpush3.bf16.msra.mxu0 %v227_v38 }
  0x3f   :  { %230 = vmatprep.subr.bf16.mxu0 %v229_v39 }
  0x42   :  { %232 = vmatpush3.bf16.msra.mxu0 %v231_v44 }
  0x43   :  { %234 = vmatprep.subr.bf16.mxu0 %v233_v45 }
  0x46   :  { %236 = vmatpush3.bf16.msra.mxu0 %v235_v48 }
  0x49   :  { %147 = vmatmul.mubr.f32.vlgmr.msra.gmra.mrb[0].mxu0 %v41_v49 }
 0x11c   :  { %v202_v50 = vpop.f32.mrb[0].mxu0 }
 0x11d   :  { %v203_v52 = vpop.f32.mrb[1].mxu0 }
 0x11e   :  { %v204_v53 = vadd.f32 %v203_v52, %v202_v50 }
 0x120   :  { %v149_v54 = vadd.f32 %v204_v53, %v169_v51 }
 0x122   :  { %152 = vst [vmem:[#allocation7] sm:$0xff] %v149_v54 }
 0x123   :  { %297 = shalt.err (!%p294_p6)
}
 0x124   :  { %s298_s16 = scalar_lea.hbm %s388_s3, 128 }
 0x125   :  { %p299_p7 = scmp.ne.s32.totalorder %s388_s3, %s298_s16  ;;  %p302_p8 = scmp.lt.u32.totalorder %s298_s16, %s388_s3 }
 0x127   :  { %p304_p9 = pnand %p302_p8, %p299_p7 }
 0x129   :  { %307 = shalt.err (!%p304_p9)
}
 0x12a   :  { %162 = dma.vmem_to_hbm [thread:$0]  %s160_s12, 128, %s388_s3, [#allocation4]  }
 0x12b   :  { %312 = dma.done.wait [#allocation4], 128  }
 0x12c   :  { %313 = vsyncadd [#allocation4], 4294967168 }
 0x12d   :  { %166 = vsyncpa [#allocation3], 1 }
 0x12e   :  { %167 = vsyncpa [#allocation6], 1 }
 0x12f   :  { %168 = vsyncpa [#allocation4], 1 }

</bundles_post_ra>
